<compile_context>
chip_gen: v7x
topology: tpu7x:2x2x1
jax: 0.10.0
libtpu: 0.0.40
codegen_flags: <defaults>
</compile_context>

<pallas_src>
import jax
import jax.numpy as jnp
from jax.experimental import pallas as pl
from jax.experimental.pallas import tpu as pltpu


def _vq_kernel(x_ref, cb2_ref, cbt_ref, cbsq_ref, q_ref, loss_ref):
    """One (batch, spatial-tile) block: quantize to nearest codebook entry."""
    x_in = x_ref[0]                                      # (C, THW), native dtype

    # scores[k, m] = ||e_k||^2 - 2 e_k . x_m  (per-pixel ||x||^2 drops out of argmin).
    # cb2 = -2 * codebook is pre-scaled in the wrapper -> no (K, THW) scalar-mul pass.
    scores = jnp.dot(cb2_ref[...], x_in,
                     preferred_element_type=jnp.float32) + cbsq_ref[...]     # (K, THW)

    num_codes = scores.shape[0]
    min_s = jnp.min(scores, axis=0, keepdims=True)                           # (1, THW)
    # (K, 1) column iota + lane broadcasts instead of a full (K, THW) iota.
    iota_k = jax.lax.broadcasted_iota(jnp.int32, (num_codes, 1), 0)          # (K, 1)
    # first index attaining the minimum (torch argmin semantics)
    idx = jnp.min(jnp.where(scores == min_s, iota_k, num_codes),
                  axis=0, keepdims=True)                                     # (1, THW)
    onehot = (iota_k == idx).astype(jnp.float32)                             # (K, THW)

    # Gather-as-matmul on the MXU, channels-major output — no transposes.
    # Kept in f32 so outputs are exact codebook rows.
    qt = jnp.dot(cbt_ref[...], onehot, preferred_element_type=jnp.float32)   # (C, THW)
    q_ref[0] = qt.astype(q_ref.dtype)

    # Per-pixel commitment-loss partials, written lane-dense (1, THW); summed
    # in the wrapper.  Diff-based (exact f32 elementwise) rather than the
    # min_s + ||x||^2 shortcut, which would inherit MXU rounding into the loss.
    xf = x_in.astype(jnp.float32)
    diff = qt - xf
    loss_ref[0, 0] = jnp.sum(diff * diff, axis=0, keepdims=True)             # (1, THW)


def _tile_vmem_bytes(thw, C, K, itemsize):
    """Rough per-step VMEM footprint: double-buffered tiles + constants + temps."""
    tiles = 2 * (2 * C * thw * itemsize) + 2 * thw * 4          # x, q (2 bufs each), loss rows
    consts = 2 * (K * C * (itemsize + 4) + K * 4)               # cb2, cbt, cbsq (buffered)
    temps = 4 * K * thw * 4 + 3 * C * thw * 4                   # scores/select/onehot + qt/diff/xf
    return tiles + consts + temps


def _pick_spatial_tile(hw_padded, batch, C, K, itemsize, *,
                       max_tile, min_steps, vmem_budget):
    """Largest lane-dense spatial tile (multiple of 128 dividing hw_padded) that
    fits the VMEM budget and still leaves >= min_steps grid steps to pipeline."""
    cap = min(hw_padded, max_tile)
    divisors = [t for t in range(128, cap + 1, 128)
                if hw_padded % t == 0 and _tile_vmem_bytes(t, C, K, itemsize) <= vmem_budget]
    if not divisors:
        return 128                      # hw_padded is always a multiple of 128
    for t in sorted(divisors, reverse=True):
        if batch * (hw_padded // t) >= min_steps:
            return t
    return divisors[0]                  # can't reach min_steps: maximize step count


def permute_to_from(x_nchw, codebook, *, max_spatial_tile=2048, min_grid_steps=8):
    """PermuteToFrom.forward with fn = VectorQuantize: returns (out_nchw, loss).

    The permute(0,2,3,1)/permute(0,3,1,2) pair is folded into the kernel's
    block layout, so no HBM transpose is ever materialized.
    max_spatial_tile: <= 2048 is safe on all chips (v7x has 64 MiB VMEM);
    v5e/v6e (128 MiB) tolerate 4096 for very large images.
    """
    B, C, H, W = x_nchw.shape
    K = codebook.shape[0]
    HW = H * W
    HWp = ((HW + 127) // 128) * 128     # pad spatial to a multiple of 128 (lane-dense)

    x3 = x_nchw.reshape(B, C, HW)       # free reshape (contiguous merge)
    if HWp != HW:
        x3 = jnp.pad(x3, ((0, 0), (0, 0), (0, HWp - HW)))

    itemsize = jnp.dtype(x_nchw.dtype).itemsize
    vmem_budget = 24 * 1024 * 1024      # headroom under the 32 MiB scoped limit
    thw = _pick_spatial_tile(HWp, B, C, K, itemsize,
                             max_tile=max_spatial_tile,
                             min_steps=min_grid_steps,
                             vmem_budget=vmem_budget)
    T = HWp // thw

    # Hoisted constants, computed once in the wrapper.
    cb_f32 = codebook.astype(jnp.float32)                       # (K, C)
    cb2 = (-2.0 * cb_f32).astype(x_nchw.dtype)                  # pre-scaled, MXU-native dtype
    cbt = cb_f32.T                                              # (C, K), f32 for exact gather
    cbsq = jnp.sum(cb_f32 * cb_f32, axis=1, keepdims=True)      # (K, 1)

    q3, loss_rows = pl.pallas_call(
        _vq_kernel,
        out_shape=(
            jax.ShapeDtypeStruct((B, C, HWp), x_nchw.dtype),
            jax.ShapeDtypeStruct((B, T, 1, thw), jnp.float32),
        ),
        grid_spec=pltpu.PrefetchScalarGridSpec(
            num_scalar_prefetch=0,
            grid=(B, T),
            in_specs=[
                pl.BlockSpec((1, C, thw), lambda b, t: (b, 0, t)),   # NCHW tile
                pl.BlockSpec((K, C), lambda b, t: (0, 0)),           # -2 * codebook
                pl.BlockSpec((C, K), lambda b, t: (0, 0)),           # codebook^T
                pl.BlockSpec((K, 1), lambda b, t: (0, 0)),           # ||e_k||^2
            ],
            out_specs=(
                pl.BlockSpec((1, C, thw), lambda b, t: (b, 0, t)),       # quantized
                pl.BlockSpec((1, 1, 1, thw), lambda b, t: (b, t, 0, 0)),  # per-pixel loss
            ),
        ),
        compiler_params=pltpu.CompilerParams(
            # All tiles are independent (loss is per-tile partials) -> both
            # axes parallel; unlocks the second TensorCore on v7x megacore.
            dimension_semantics=("parallel", "parallel"),
            # Tight budget: tile picker keeps actual use well under this;
            # leaves half of v7x's 64 MiB physical VMEM as headroom.
            vmem_limit_bytes=32 * 1024 * 1024,
        ),
    )(x3, cb2, cbt, cbsq)

    # loss = F.mse_loss(quantize, x): mean over all real (non-padded) elements.
    loss_per_pixel = loss_rows.reshape(B, T * thw)[:, :HW]
    loss = jnp.sum(loss_per_pixel) / jnp.float32(B * C * HW)
    out = q3[:, :, :HW].reshape(B, C, H, W)
    return out, loss


def _reference(x_nchw, codebook):
    """Pure-JAX reference (mirrors the PyTorch permute + VQ forward)."""
    B, C, H, W = x_nchw.shape
    x = jnp.transpose(x_nchw, (0, 2, 3, 1)).reshape(-1, C).astype(jnp.float32)
    cb = codebook.astype(jnp.float32)
    d = (jnp.sum(x * x, axis=1, keepdims=True)
         - 2.0 * x @ cb.T
         + jnp.sum(cb * cb, axis=1)[None, :])
    idx = jnp.argmin(d, axis=1)
    q = cb[idx]
    loss = jnp.mean((q - x) ** 2)
    out = jnp.transpose(q.reshape(B, H, W, C), (0, 3, 1, 2)).astype(x_nchw.dtype)
    return out, loss


if __name__ == "__main__":
    key = jax.random.PRNGKey(0)
    k_x, k_cb = jax.random.split(key)

    B, C, H, W = 2, 32, 16, 16          # x: NCHW
    K = 256                             # codebook size (fq_dict_size)

    x = jax.random.normal(k_x, (B, C, H, W), dtype=jnp.float32)
    codebook = jax.random.normal(k_cb, (K, C), dtype=jnp.float32)

    out, loss = jax.jit(permute_to_from)(x, codebook)
    jax.block_until_ready((out, loss))

    ref_out, ref_loss = _reference(x, codebook)
    assert out.shape == (B, C, H, W)
    assert jnp.allclose(out, ref_out, atol=1e-5, rtol=1e-5)
    assert jnp.allclose(loss, ref_loss, atol=1e-5, rtol=1e-5)

    print("KERNEL_OK")
</pallas_src>

<mosaic_0001>
module attributes {stable_mosaic.version = 11 : i64} {
  func.func @_vq_kernel(%arg0: i32, %arg1: i32, %arg2: memref<1x32x128xf32, #tpu.memory_space<vmem>>, %arg3: memref<256x32xf32, #tpu.memory_space<vmem>>, %arg4: memref<32x256xf32, #tpu.memory_space<vmem>>, %arg5: memref<256x1xf32, #tpu.memory_space<vmem>>, %arg6: memref<1x32x128xf32, #tpu.memory_space<vmem>>, %arg7: memref<1x1x1x128xf32, #tpu.memory_space<vmem>>) attributes {dimension_semantics = [#tpu.dimension_semantics<parallel>, #tpu.dimension_semantics<parallel>], iteration_bounds = array<i64: 2, 2>, scalar_prefetch = 0 : i64, scratch_operands = 0 : i64, tpu.core_type = #tpu.core_type<tc>, window_params = [{transform_indices = @transform_0, window_bounds = array<i64: 1, 32, 128>}, {pipeline_mode = #tpu.pipeline_mode<synchronous>, transform_indices = @transform_1, window_bounds = array<i64: 256, 32>}, {pipeline_mode = #tpu.pipeline_mode<synchronous>, transform_indices = @transform_2, window_bounds = array<i64: 32, 256>}, {pipeline_mode = #tpu.pipeline_mode<synchronous>, transform_indices = @transform_3, window_bounds = array<i64: 256, 1>}, {transform_indices = @transform_4, window_bounds = array<i64: 1, 32, 128>}, {transform_indices = @transform_5, window_bounds = array<i64: 1, 1, 1, 128>}]} {
    %c0 = arith.constant 0 : index
    %c0_0 = arith.constant 0 : index
    %c0_1 = arith.constant 0 : index
    %0 = vector.load %arg2[%c0, %c0_0, %c0_1] : memref<1x32x128xf32, #tpu.memory_space<vmem>>, vector<1x32x128xf32>
    %1 = vector.shape_cast %0 : vector<1x32x128xf32> to vector<32x128xf32>
    %c0_2 = arith.constant 0 : index
    %c0_3 = arith.constant 0 : index
    %2 = vector.load %arg3[%c0_2, %c0_3] : memref<256x32xf32, #tpu.memory_space<vmem>>, vector<256x32xf32>
    %cst = arith.constant dense<0.000000e+00> : vector<256x128xf32>
    %3 = tpu.matmul %2, %1, %cst {dimension_numbers = #tpu.dot_dimension_numbers<[1], [0], [0], [1], [0, 0, 1, 1], [], []>} : vector<256x32xf32>, vector<32x128xf32>, vector<256x128xf32> -> vector<256x128xf32>
    %c0_4 = arith.constant 0 : index
    %c0_5 = arith.constant 0 : index
    %4 = vector.load %arg5[%c0_4, %c0_5] : memref<256x1xf32, #tpu.memory_space<vmem>>, vector<256x1xf32>
    %5 = vector.broadcast %4 : vector<256x1xf32> to vector<256x128xf32>
    %6 = arith.addf %3, %5 : vector<256x128xf32>
    %cst_6 = arith.constant dense<0x7F800000> : vector<128xf32>
    %7 = vector.multi_reduction <minimumf>, %6, %cst_6 [0] : vector<256x128xf32> to vector<128xf32>
    %8 = vector.shape_cast %7 : vector<128xf32> to vector<1x128xf32>
    %9 = tpu.iota {dimensions = array<i32: 0>} : vector<256x1xi32>
    %10 = vector.broadcast %8 : vector<1x128xf32> to vector<256x128xf32>
    %11 = arith.cmpf oeq, %6, %10 : vector<256x128xf32>
    %c256_i32 = arith.constant 256 : i32
    %12 = vector.shape_cast %9 : vector<256x1xi32> to vector<256x1xi32>
    %13 = vector.broadcast %12 : vector<256x1xi32> to vector<256x128xi32>
    %14 = vector.broadcast %c256_i32 : i32 to vector<256x128xi32>
    %15 = arith.select %11, %13, %14 : vector<256x128xi1>, vector<256x128xi32>
    %cst_7 = arith.constant dense<2147483647> : vector<128xi32>
    %16 = vector.multi_reduction <minsi>, %15, %cst_7 [0] : vector<256x128xi32> to vector<128xi32>
    %17 = vector.shape_cast %16 : vector<128xi32> to vector<1x128xi32>
    %18 = vector.broadcast %9 : vector<256x1xi32> to vector<256x128xi32>
    %19 = vector.broadcast %17 : vector<1x128xi32> to vector<256x128xi32>
    %20 = arith.cmpi eq, %18, %19 : vector<256x128xi32>
    %21 = arith.extui %20 : vector<256x128xi1> to vector<256x128xi32>
    %22 = arith.sitofp %21 : vector<256x128xi32> to vector<256x128xf32>
    %c0_8 = arith.constant 0 : index
    %c0_9 = arith.constant 0 : index
    %23 = vector.load %arg4[%c0_8, %c0_9] : memref<32x256xf32, #tpu.memory_space<vmem>>, vector<32x256xf32>
    %cst_10 = arith.constant dense<0.000000e+00> : vector<32x128xf32>
    %24 = tpu.matmul %23, %22, %cst_10 {dimension_numbers = #tpu.dot_dimension_numbers<[1], [0], [0], [1], [0, 0, 1, 1], [], []>} : vector<32x256xf32>, vector<256x128xf32>, vector<32x128xf32> -> vector<32x128xf32>
    %c0_11 = arith.constant 0 : index
    %c0_12 = arith.constant 0 : index
    %c0_13 = arith.constant 0 : index
    %25 = vector.load %arg6[%c0_11, %c0_12, %c0_13] : memref<1x32x128xf32, #tpu.memory_space<vmem>>, vector<1x32x128xf32>
    %26 = vector.shape_cast %25 : vector<1x32x128xf32> to vector<32x128xf32>
    %27 = vector.shape_cast %24 : vector<32x128xf32> to vector<1x32x128xf32>
    tpu.vector_store %arg6[%c0_11, %c0_12, %c0_13], %27 {strides = array<i32>} : memref<1x32x128xf32, #tpu.memory_space<vmem>>, vector<1x32x128xf32>,
    %28 = arith.subf %24, %1 : vector<32x128xf32>
    %29 = arith.mulf %28, %28 : vector<32x128xf32>
    %cst_14 = arith.constant dense<0.000000e+00> : vector<128xf32>
    %30 = vector.multi_reduction <add>, %29, %cst_14 [0] : vector<32x128xf32> to vector<128xf32>
    %31 = vector.shape_cast %30 : vector<128xf32> to vector<1x128xf32>
    %c0_15 = arith.constant 0 : index
    %c0_16 = arith.constant 0 : index
    %c0_17 = arith.constant 0 : index
    %c0_18 = arith.constant 0 : index
    %32 = vector.load %arg7[%c0_15, %c0_16, %c0_17, %c0_18] : memref<1x1x1x128xf32, #tpu.memory_space<vmem>>, vector<1x1x1x128xf32>
    %33 = vector.shape_cast %32 : vector<1x1x1x128xf32> to vector<1x128xf32>
    %34 = vector.shape_cast %31 : vector<1x128xf32> to vector<1x1x1x128xf32>
    tpu.vector_store %arg7[%c0_15, %c0_16, %c0_17, %c0_18], %34 {strides = array<i32>} : memref<1x1x1x128xf32, #tpu.memory_space<vmem>>, vector<1x1x1x128xf32>,
    return
  }
  func.func @transform_0(%arg0: i32, %arg1: i32) -> (i32, i32, i32) {
    %c0_i32 = arith.constant 0 : i32
    %c0_i32_0 = arith.constant 0 : i32
    return %arg0, %c0_i32, %arg1 : i32, i32, i32
  }
  func.func @transform_1(%arg0: i32, %arg1: i32) -> (i32, i32) {
    %c0_i32 = arith.constant 0 : i32
    %c0_i32_0 = arith.constant 0 : i32
    %c0_i32_1 = arith.constant 0 : i32
    return %c0_i32, %c0_i32_0 : i32, i32
  }
  func.func @transform_2(%arg0: i32, %arg1: i32) -> (i32, i32) {
    %c0_i32 = arith.constant 0 : i32
    %c0_i32_0 = arith.constant 0 : i32
    %c0_i32_1 = arith.constant 0 : i32
    return %c0_i32, %c0_i32_0 : i32, i32
  }
  func.func @transform_3(%arg0: i32, %arg1: i32) -> (i32, i32) {
    %c0_i32 = arith.constant 0 : i32
    %c0_i32_0 = arith.constant 0 : i32
    %c0_i32_1 = arith.constant 0 : i32
    return %c0_i32, %c0_i32_0 : i32, i32
  }
  func.func @transform_4(%arg0: i32, %arg1: i32) -> (i32, i32, i32) {
    %c0_i32 = arith.constant 0 : i32
    %c0_i32_0 = arith.constant 0 : i32
    return %arg0, %c0_i32, %arg1 : i32, i32, i32
  }
  func.func @transform_5(%arg0: i32, %arg1: i32) -> (i32, i32, i32, i32) {
    %c0_i32 = arith.constant 0 : i32
    %c0_i32_0 = arith.constant 0 : i32
    %c0_i32_1 = arith.constant 0 : i32
    return %arg0, %arg1, %c0_i32, %c0_i32_0 : i32, i32, i32, i32
  }
}

</mosaic_0001>

<bundles_post_ra>
// kernel: permute_to_from.1
= control target key start
LH: loop header
LB: loop body
LE: loop exit
PB: predicated region body
PF: predicated region fallthrough
CT: control target
= control target key end

     0   :  { %s1876_s18 = smov 0   ;;  %s1878_s19 = smov 0   ;;  %s2702_s0 = inlined_call_operand.vmem [shape: f32[2,32,256], index: 0, kind: input, shape index: {}]   ;;  %s2703_s1 = inlined_call_operand.vmem [shape: f32[256,32], index: 1, kind: input, shape index: {}]   ;;  %s2704_s2 = inlined_call_operand.vmem [shape: f32[32,256], index: 2, kind: input, shape index: {}]   ;;  %s2705_s3 = inlined_call_operand.vmem [shape: f32[256,1], index: 3, kind: input, shape index: {}]   ;;  %s2706_s4 = inlined_call_operand.vmem [shape: f32[2,32,256], index: 4, kind: output, shape index: {0}]   ;;  %s2707_s5 = inlined_call_operand.vmem [shape: f32[2,2,1,128], index: 5, kind: output, shape index: {1}]  }
   0x1   :  { %s1880_s20 = smov 0   ;;  %s1882_s21 = smov 0  }
   0x2   :  { %s1884_s22 = smov 0   ;;  %s1886_s23 = smov 0  }
   0x3   :  { %s1888_s24 = smov 0  }
   0x4 LB: > { %s25_s25 = sadd.s32 1, %s1834_s22  ;;  %s28_s26 = sadd.s32 1, %s1838_s23  ;;  %s1842_s24 = sphi %s1888_s24, %s16_s24   ;;  %s1838_s23 = sphi %s1886_s23, %s2779_s23   ;;  %s1834_s22 = sphi %s1884_s22, %s2778_s22   ;;  %s1830_s21 = sphi %s1882_s21, %s2777_s21   ;;  %s1826_s20 = sphi %s1880_s20, %s2776_s20   ;;  %s1822_s19 = sphi %s1878_s19, %s2775_s19   ;;  %s1818_s18 = sphi %s1876_s18, %s2774_s18  }
   0x5   : > { %p26_p0 = scmp.ge.s32.totalorder %s25_s25, 2  ;;  %s1436_s27 = sadd.s32 4294967295, %s1842_s24  }
   0x6   : > { %p44_p1 = scmp.ne.s32.totalorder %s1822_s19, %s1818_s18  ;;  %p45_p2 = scmp.eq.s32.totalorder %s1842_s24, 0 }
   0x7   : > { %s2781_s25 = smov (%p26_p0, %s25_s25), 0  ;;  %s2783_s26 = smov (!%p26_p0, %s28_s26), %s1838_s23 }
   0x8   : > { %p30_p3 = scmp.ge.s32.totalorder %s2783_s26, 2  ;;  %p139_p4 = scmp.eq.s32.totalorder %s1436_s27, 3 }
   0x9   : > { %s33_s28 = ssub.s32 %s1834_s22, %s2781_s25  ;;  %p46_p5 = por %p45_p2, %p44_p1 }
   0xa   : > { %s2785_s26 = smov (%p30_p3, %s2783_s26), 0  ;;  %p1924_p6 = por %p139_p4, %p44_p1 }
   0xb   : > { %s32_s30 = ssub.s32 %s1838_s23, %s2785_s26  ;;  %s37_s7 = sadd.s32 1, %s1822_s19 }
   0xc   : > { %s34_s6 = sor.u32 %s33_s28, %s32_s30  ;;  %p1439_p8 = scmp.ge.s32.totalorder %s1842_s24, 4 }
   0xd   : > { %p35_p7 = scmp.eq.s32.totalorder %s34_s6, 0 }
   0xe   : > { %198 = sbr.rel (%p1439_p8) target bundleno = 29 (0x1d), region = 28 }
   0xf   : > { %s1932_s8 = scalar_select %p35_p7, %s1822_s19, %s37_s7  }
  0x15   : > { %201 = sbr.rel (!%p46_p5) target bundleno = 29 (0x1d), region = 32  ;;  %s203_s9 = sand.u32 (%p46_p5), 1, %s1822_s19  }
  0x16   : > { %s1441_s10 = sshll.u32 (%p46_p5), %s1838_s23, 3  ;;  %s1440_s11 = sshll.u32 (%p46_p5), %s203_s9, 5 }
  0x17   : > { %s207_s12 = sadd.s32 (%p46_p5), %s1834_s22, %s1441_s10  ;;  %s205_s17 = scalar_lea.vmem (%p46_p5), [#allocation2], %s1440_s11 }
  0x18   : > { %s1442_s13 = sshll.u32 (%p46_p5), %s207_s12, 3 }
  0x19   : > { %s209_s16 = scalar_lea.vmem (%p46_p5), %s2702_s0, %s1442_s13 }
  0x1a   : > { %v243_v0 = vld [vmem:[%s209_s16] sm:$0xff] (%p46_p5)  ;;  %v245_v1 = vld [vmem:[%s209_s16 + $0x10] sm:$0xff] (%p46_p5) }
  0x1b   : > { %v247_v2 = vld [vmem:[%s209_s16 + $0x20] sm:$0xff] (%p46_p5)  ;;  %244 = vst [vmem:[%s205_s17] sm:$0xff] (%p46_p5), %v243_v0  ;;  %246 = vst [vmem:[%s205_s17 + $0x8] sm:$0xff] (%p46_p5), %v245_v1  ;;  %v249_v3 = vld [vmem:[%s209_s16 + $0x30] sm:$0xff] (%p46_p5) }
  0x1c   : > { %248 = vst [vmem:[%s205_s17 + $0x10] sm:$0xff] %v247_v2  ;;  %250 = vst [vmem:[%s205_s17 + $0x18] sm:$0xff] %v249_v3 }
  0x1d PF: > { %p1443_p9 = scmp.ge.s32.totalorder %s1842_s24, 1  ;;  %p255_p10 = scmp.lt.s32.totalorder %s1842_s24, 5 }
  0x1f   : > { %p256_p11 = pnand %p1443_p9, %p255_p10 }
  0x21   : > { %259 = sbr.rel (%p256_p11) target bundleno = 673 (0x2a1), region = 70 }
  0x28   : > { %s262_s27 = sand.u32 1, %s1818_s18   ;;  %v306_v4 = vld [vmem:[%s2703_s1] sm:$0xff]  ;;  %vm530_vm0 = vcmask 261120   ;;  %v1844_v5 = vmov 0   ;;  %v340_v12 = vld [vmem:[%s2705_s3 + $0x10] sm:$0xff]  ;;  %v341_v14 = vld [vmem:[%s2705_s3 + $0x18] sm:$0xff] }
  0x29   : > { %s1947_s6 = sshll.u32 %s262_s27, 5  ;;  %1636 = vmatprep.mubr.msk.f32.mxu0 %vm530_vm0, %v306_v4  ;;  %1783 = vset.pattern.permute.xlu1 %v1844_v5  ;;  %v338_v13 = vld [vmem:[%s2705_s3] sm:$0xff]  ;;  %v339_v15 = vld [vmem:[%s2705_s3 + $0x8] sm:$0xff]  ;;  %v308_v17 = vld [vmem:[%s2703_s1 + $0x10] sm:$0xff]  ;;  %p295_p12 = scmp.lt.s32.totalorder %s1830_s21, 1 }
  0x2a   : > { %1782 = vset.pattern.permute.xlu0 %v1844_v5  ;;  %s1951_s7 = scalar_lea.vmem [#allocation2], %s1947_s6  ;;  %382 = vperm.xlu1 %1783, %v340_v12   ;;  %v307_v16 = vld [vmem:[%s2703_s1 + $0x8] sm:$0xff]  ;;  %v342_v19 = vld [vmem:[%s2705_s3 + $0x20] sm:$0xff]  ;;  %v309_v20 = vld [vmem:[%s2703_s1 + $0x18] sm:$0xff]  ;;  %s2653_s30 = scalar_lea.vmem [#allocation3], %s1947_s6 }
  0x2b   : > { %v302_v6 = vld [vmem:[%s1951_s7] sm:$0xff]  ;;  %v303_v7 = vld [vmem:[%s1951_s7 + $0x8] sm:$0xff]  ;;  %v304_v8 = vld [vmem:[%s1951_s7 + $0x10] sm:$0xff]  ;;  %372 = vperm.xlu0 %1782, %v338_v13   ;;  %p297_p13 = scmp.lt.s32.totalorder %s1826_s20, 1 }
  0x2c   : > { %v1684_v9 = vpack.c.bf16 %v303_v7, %v302_v6  ;;  %v305_v10 = vld [vmem:[%s1951_s7 + $0x18] sm:$0xff]  ;;  %v343_v18 = vld [vmem:[%s2705_s3 + $0x28] sm:$0xff]  ;;  %v310_v21 = vld [vmem:[%s2703_s1 + $0x20] sm:$0xff]  ;;  %s296_s6 = scalar_select %p295_p12, %s1830_s21, 1 }
  0x2d   : > { %v1688_v11 = vpack.c.bf16 %v305_v10, %v304_v8  ;;  %v345_v22 = vld [vmem:[%s2705_s3 + $0x38] sm:$0xff]  ;;  %v344_v23 = vld [vmem:[%s2705_s3 + $0x30] sm:$0xff]  ;;  %v311_v24 = vld [vmem:[%s2703_s1 + $0x28] sm:$0xff]  ;;  %s298_s18 = scalar_select %p297_p13, %s1826_s20, 1 }
  0x2e   : > { %1685 = vmatprep.subr.bf16.mxu0 %v1684_v9  ;;  %387 = vperm.xlu1 %1783, %v341_v14   ;;  %v312_v25 = vld [vmem:[%s2703_s1 + $0x30] sm:$0xff]  ;;  %v347_v26 = vld [vmem:[%s2705_s3 + $0x48] sm:$0xff]  ;;  %v346_v27 = vld [vmem:[%s2705_s3 + $0x40] sm:$0xff]  ;;  %s1446_s9 = sshll.u32 %s296_s6, 1 }
  0x2f   : > { %1687 = vmatpush3.bf16.msra.mxu0 %v1684_v9  ;;  %377 = vperm.xlu0 %1782, %v339_v15   ;;  %v313_v28 = vld [vmem:[%s2703_s1 + $0x38] sm:$0xff]  ;;  %v314_v29 = vld [vmem:[%s2703_s1 + $0x40] sm:$0xff]  ;;  %v348_v31 = vld [vmem:[%s2705_s3 + $0x50] sm:$0xff]  ;;  %s300_s10 = sadd.s32 %s1446_s9, %s298_s18 }
  0x30   : > { %1689 = vmatprep.subr.bf16.mxu0 %v1688_v11  ;;  %v349_v30 = vld [vmem:[%s2705_s3 + $0x58] sm:$0xff]  ;;  %v315_v32 = vld [vmem:[%s2703_s1 + $0x48] sm:$0xff]  ;;  %v316_v33 = vld [vmem:[%s2703_s1 + $0x50] sm:$0xff]  ;;  %s301_s13 = scalar_lea.vmem %s2707_s5, %s300_s10 }
  0x31   : > { %v351_v34 = vld [vmem:[%s2705_s3 + $0x68] sm:$0xff]  ;;  %v350_v35 = vld [vmem:[%s2705_s3 + $0x60] sm:$0xff]  ;;  %v317_v36 = vld [vmem:[%s2703_s1 + $0x58] sm:$0xff] }
  0x32   : > { %397 = vperm.xlu1 %1783, %v343_v18   ;;  %v318_v37 = vld [vmem:[%s2703_s1 + $0x60] sm:$0xff]  ;;  %v353_v38 = vld [vmem:[%s2705_s3 + $0x78] sm:$0xff]  ;;  %v352_v39 = vld [vmem:[%s2705_s3 + $0x70] sm:$0xff] }
  0x33   : > { %1691 = vmatpush3.bf16.msra.mxu0 %v1688_v11  ;;  %392 = vperm.xlu0 %1782, %v342_v19   ;;  %v319_v40 = vld [vmem:[%s2703_s1 + $0x68] sm:$0xff]  ;;  %v320_v41 = vld [vmem:[%s2703_s1 + $0x70] sm:$0xff]  ;;  %v354_v43 = vld [vmem:[%s2705_s3 + $0x80] sm:$0xff] }
  0x34   : > { %v355_v42 = vld [vmem:[%s2705_s3 + $0x88] sm:$0xff]  ;;  %v321_v44 = vld [vmem:[%s2703_s1 + $0x78] sm:$0xff]  ;;  %v322_v45 = vld [vmem:[%s2703_s1 + $0x80] sm:$0xff] }
  0x35   : > { %v357_v46 = vld [vmem:[%s2705_s3 + $0x98] sm:$0xff]  ;;  %v356_v47 = vld [vmem:[%s2705_s3 + $0x90] sm:$0xff]  ;;  %v323_v48 = vld [vmem:[%s2703_s1 + $0x88] sm:$0xff] }
  0x36   : > { %1637 = vmatmul.mubr.msk.f32.vlgmr.msra.gmra.mrb[0].mxu0 %vm530_vm0, %v307_v16  ;;  %407 = vperm.xlu1 %1783, %v345_v22   ;;  %v324_v49 = vld [vmem:[%s2703_s1 + $0x90] sm:$0xff]  ;;  %v359_v50 = vld [vmem:[%s2705_s3 + $0xa8] sm:$0xff]  ;;  %v358_v51 = vld [vmem:[%s2705_s3 + $0xa0] sm:$0xff] }
  0x37   : > { %1639 = vmatprep.mubr.msk.f32.mxu0 %vm530_vm0, %v308_v17  ;;  %402 = vperm.xlu0 %1782, %v344_v23   ;;  %v325_v52 = vld [vmem:[%s2703_s1 + $0x98] sm:$0xff]  ;;  %v326_v53 = vld [vmem:[%s2703_s1 + $0xa0] sm:$0xff]  ;;  %v360_v55 = vld [vmem:[%s2705_s3 + $0xb0] sm:$0xff] }
  0x38   : > { %v361_v54 = vld [vmem:[%s2705_s3 + $0xb8] sm:$0xff]  ;;  %v327_v56 = vld [vmem:[%s2703_s1 + $0xa8] sm:$0xff]  ;;  %v328_v57 = vld [vmem:[%s2703_s1 + $0xb0] sm:$0xff] }
  0x39   : > { %v363_v58 = vld [vmem:[%s2705_s3 + $0xc8] sm:$0xff]  ;;  %v362_v59 = vld [vmem:[%s2705_s3 + $0xc0] sm:$0xff]  ;;  %v329_v60 = vld [vmem:[%s2703_s1 + $0xb8] sm:$0xff] }
  0x3a   : > { %1640 = vmatmul.mubr.msk.f32.gmra.mrb[2].mxu0 %vm530_vm0, %v309_v20  ;;  %417 = vperm.xlu1 %1783, %v347_v26   ;;  %v330_v61 = vld [vmem:[%s2703_s1 + $0xc0] sm:$0xff]  ;;  %v365_v62 = vld [vmem:[%s2705_s3 + $0xd8] sm:$0xff]  ;;  %v364_v63 = vld [vmem:[%s2705_s3 + $0xd0] sm:$0xff] }
  0x3b   : > { %1642 = vmatprep.mubr.msk.f32.mxu0 %vm530_vm0, %v310_v21  ;;  %412 = vperm.xlu0 %1782, %v346_v27   ;;  %v331_v0 = vld [vmem:[%s2703_s1 + $0xc8] sm:$0xff]  ;;  %v332_v1 = vld [vmem:[%s2703_s1 + $0xd0] sm:$0xff]  ;;  %v366_v3 = vld [vmem:[%s2705_s3 + $0xe0] sm:$0xff] }
  0x3c   : > { %v367_v2 = vld [vmem:[%s2705_s3 + $0xe8] sm:$0xff]  ;;  %v333_v4 = vld [vmem:[%s2703_s1 + $0xd8] sm:$0xff]  ;;  %v334_v5 = vld [vmem:[%s2703_s1 + $0xe0] sm:$0xff] }
  0x3d   : > { %v369_v6 = vld [vmem:[%s2705_s3 + $0xf8] sm:$0xff]  ;;  %v368_v7 = vld [vmem:[%s2705_s3 + $0xf0] sm:$0xff]  ;;  %v335_v8 = vld [vmem:[%s2703_s1 + $0xe8] sm:$0xff] }
  0x3e   : > { %1643 = vmatmul.mubr.msk.f32.gmra.mrb[4].mxu0 %vm530_vm0, %v311_v24  ;;  %427 = vperm.xlu1 %1783, %v349_v30   ;;  %v336_v9 = vld [vmem:[%s2703_s1 + $0xf0] sm:$0xff]  ;;  %v337_v10 = vld [vmem:[%s2703_s1 + $0xf8] sm:$0xff] }
  0x3f   : > { %1645 = vmatprep.mubr.msk.f32.mxu0 %vm530_vm0, %v312_v25  ;;  %422 = vperm.xlu0 %1782, %v348_v31  }
  0x42   : > { %1646 = vmatmul.mubr.msk.f32.gmra.mrb[6].mxu0 %vm530_vm0, %v313_v28  ;;  %437 = vperm.xlu1 %1783, %v351_v34  }
  0x43   : > { %1648 = vmatprep.mubr.msk.f32.mxu0 %vm530_vm0, %v314_v29  ;;  %432 = vperm.xlu0 %1782, %v350_v35  }
  0x46   : > { %1649 = vmatmul.mubr.msk.f32.gmra.mrb[8].mxu0 %vm530_vm0, %v315_v32  ;;  %447 = vperm.xlu1 %1783, %v353_v38  }
  0x47   : > { %1651 = vmatprep.mubr.msk.f32.mxu0 %vm530_vm0, %v316_v33  ;;  %442 = vperm.xlu0 %1782, %v352_v39  }
  0x4a   : > { %1652 = vmatmul.mubr.msk.f32.gmra.mrb[10].mxu0 %vm530_vm0, %v317_v36  ;;  %457 = vperm.xlu1 %1783, %v355_v42  }
  0x4b   : > { %1654 = vmatprep.mubr.msk.f32.mxu0 %vm530_vm0, %v318_v37  ;;  %452 = vperm.xlu0 %1782, %v354_v43  }
  0x4e   : > { %1655 = vmatmul.mubr.msk.f32.gmra.mrb[12].mxu0 %vm530_vm0, %v319_v40  ;;  %467 = vperm.xlu1 %1783, %v357_v46  }
  0x4f   : > { %1657 = vmatprep.mubr.msk.f32.mxu0 %vm530_vm0, %v320_v41  ;;  %462 = vperm.xlu0 %1782, %v356_v47  }
  0x52   : > { %1658 = vmatmul.mubr.msk.f32.gmra.mrb[14].mxu0 %vm530_vm0, %v321_v44  ;;  %477 = vperm.xlu1 %1783, %v359_v50  }
  0x53   : > { %1660 = vmatprep.mubr.msk.f32.mxu0 %vm530_vm0, %v322_v45  ;;  %472 = vperm.xlu0 %1782, %v358_v51  }
  0x56   : > { %1661 = vmatmul.mubr.msk.f32.gmra.mrb[16].mxu0 %vm530_vm0, %v323_v48  ;;  %487 = vperm.xlu1 %1783, %v361_v54  }
  0x57   : > { %1663 = vmatprep.mubr.msk.f32.mxu0 %vm530_vm0, %v324_v49  ;;  %482 = vperm.xlu0 %1782, %v360_v55  }
  0x5a   : > { %1664 = vmatmul.mubr.msk.f32.gmra.mrb[18].mxu0 %vm530_vm0, %v325_v52  ;;  %497 = vperm.xlu1 %1783, %v363_v58  }
  0x5b   : > { %1666 = vmatprep.mubr.msk.f32.mxu0 %vm530_vm0, %v326_v53  ;;  %492 = vperm.xlu0 %1782, %v362_v59  }
  0x5e   : > { %1667 = vmatmul.mubr.msk.f32.gmra.mrb[20].mxu0 %vm530_vm0, %v327_v56  ;;  %507 = vperm.xlu1 %1783, %v365_v62  }
  0x5f   : > { %1669 = vmatprep.mubr.msk.f32.mxu0 %vm530_vm0, %v328_v57  ;;  %502 = vperm.xlu0 %1782, %v364_v63  }
  0x62   : > { %1670 = vmatmul.mubr.msk.f32.gmra.mrb[22].mxu0 %vm530_vm0, %v329_v60  ;;  %517 = vperm.xlu1 %1783, %v367_v2  }
  0x63   : > { %1672 = vmatprep.mubr.msk.f32.mxu0 %vm530_vm0, %v330_v61  ;;  %512 = vperm.xlu0 %1782, %v366_v3  }
  0x66   : > { %1673 = vmatmul.mubr.msk.f32.gmra.mrb[24].mxu0 %vm530_vm0, %v331_v0  ;;  %527 = vperm.xlu1 %1783, %v369_v6  }
  0x67   : > { %1675 = vmatprep.mubr.msk.f32.mxu0 %vm530_vm0, %v332_v1  ;;  %522 = vperm.xlu0 %1782, %v368_v7  }
  0x6a   : > { %1676 = vmatmul.mubr.msk.f32.gmra.mrb[26].mxu0 %vm530_vm0, %v333_v4 }
  0x6b   : > { %1678 = vmatprep.mubr.msk.f32.mxu0 %vm530_vm0, %v334_v5 }
  0x6e   : > { %1679 = vmatmul.mubr.msk.f32.gmra.mrb[28].mxu0 %vm530_vm0, %v335_v8 }
  0x6f   : > { %1681 = vmatprep.mubr.msk.f32.mxu0 %vm530_vm0, %v336_v9 }
  0x72   : > { %1682 = vmatmul.mubr.msk.f32.gmra.mrb[30].mxu0 %vm530_vm0, %v337_v10 }
  0xa9   : > { %v383_v11 = vpop.permute.xlu1 %382 }
  0xaa   : > { %v373_v12 = vpop.permute.xlu0 %372 }
  0xad   : > { %v388_v13 = vpop.permute.xlu1 %387 }
  0xae   : > { %v378_v14 = vpop.permute.xlu0 %377 }
  0xb1   : > { %v398_v15 = vpop.permute.xlu1 %397 }
  0xb2   : > { %v393_v16 = vpop.permute.xlu0 %392 }
  0xb5   : > { %v408_v17 = vpop.permute.xlu1 %407 }
  0xb6   : > { %v403_v18 = vpop.permute.xlu0 %402 }
  0xb9   : > { %v418_v19 = vpop.permute.xlu1 %417 }
  0xba   : > { %v413_v20 = vpop.permute.xlu0 %412 }
  0xbd   : > { %v428_v21 = vpop.permute.xlu1 %427 }
  0xbe   : > { %v423_v23 = vpop.permute.xlu0 %422 }
  0xc1   : > { %v438_v27 = vpop.permute.xlu1 %437 }
  0xc2   : > { %v433_v28 = vpop.permute.xlu0 %432 }
  0xc5   : > { %v448_v36 = vpop.permute.xlu1 %447 }
  0xc6   : > { %v443_v39 = vpop.permute.xlu0 %442 }
  0xc9   : > { %v458_v50 = vpop.permute.xlu1 %457 }
  0xca   : > { %v453_v52 = vpop.permute.xlu0 %452 }
  0xcd   : > { %v468_v60 = vpop.permute.xlu1 %467 }
  0xce   : > { %v463_v63 = vpop.permute.xlu0 %462 }
  0xd1   : > { %v478_v8 = vpop.permute.xlu1 %477 }
  0xd2   : > { %v473_v10 = vpop.permute.xlu0 %472 }
 0x109   : > { %v1638_v22 = vpop.f32.mrb[0].mxu0 }
 0x10a   : > { %v693_v24 = vpop.f32.mrb[1].mxu0  ;;  %v2177_v30 = vadd.f32 %v1638_v22, %v378_v14  ;;  %v483_v22 = vpop.permute.xlu0 %482 }
 0x10b   : > { %v2181_v33 = vadd.f32 %v693_v24, %v373_v12  ;;  %v1154_v12 = vld [vmem:[%s2704_s2 + $0x8] sm:$0xff] }
 0x10c   : > { %1225 = vmatprep.mubr.f32.mxu1 %v1154_v12 }
 0x10d   : > { %v1641_v25 = vpop.f32.mrb[2].mxu0 }
 0x10e   : > { %v703_v26 = vpop.f32.mrb[3].mxu0  ;;  %v2189_v40 = vadd.f32 %v1641_v25, %v388_v13 }
 0x10f   : > { %v2193_v43 = vadd.f32 %v703_v26, %v383_v11 }
 0x111   : > { %v1644_v29 = vpop.f32.mrb[4].mxu0 }
 0x112   : > { %v2179_v31 = vadd.f32 %v1644_v29, %v398_v15  ;;  %v713_v32 = vpop.f32.mrb[5].mxu0 }
 0x113   : > { %v2183_v34 = vadd.f32 %v713_v32, %v393_v16 }
 0x114   : > { %v853_v35 = vmin.f32 %v2177_v30, %v2179_v31 }
 0x115   : > { %v852_v37 = vmin.f32 %v2181_v33, %v2183_v34  ;;  %v1647_v38 = vpop.f32.mrb[6].mxu0 }
 0x116   : > { %v2191_v41 = vadd.f32 %v1647_v38, %v408_v17  ;;  %v723_v42 = vpop.f32.mrb[7].mxu0 }
 0x117   : > { %v2195_v44 = vadd.f32 %v723_v42, %v403_v18 }
 0x118   : > { %v855_v45 = vmin.f32 %v2189_v40, %v2191_v41 }
 0x119   : > { %v854_v46 = vmin.f32 %v2193_v43, %v2195_v44  ;;  %v1650_v47 = vpop.f32.mrb[8].mxu0 }
 0x11a   : > { %v2201_v48 = vadd.f32 %v1650_v47, %v418_v19  ;;  %v733_v49 = vpop.f32.mrb[9].mxu0  ;;  %v488_v19 = vpop.permute.xlu1 %487 }
 0x11b   : > { %v2203_v51 = vadd.f32 %v733_v49, %v413_v20 }
 0x11c   : > { %v857_v53 = vmin.f32 %v853_v35, %v2201_v48 }
 0x11d   : > { %v856_v54 = vmin.f32 %v852_v37, %v2203_v51  ;;  %v1653_v55 = vpop.f32.mrb[10].mxu0  ;;  %v493_v37 = vpop.permute.xlu0 %492 }
 0x11e   : > { %v2207_v56 = vadd.f32 %v1653_v55, %v428_v21  ;;  %v743_v57 = vpop.f32.mrb[11].mxu0  ;;  %v498_v35 = vpop.permute.xlu1 %497 }
 0x11f   : > { %v2209_v58 = vadd.f32 %v743_v57, %v423_v23 }
 0x120   : > { %v859_v59 = vmin.f32 %v855_v45, %v2207_v56 }
 0x121   : > { %v858_v61 = vmin.f32 %v854_v46, %v2209_v58  ;;  %v1656_v62 = vpop.f32.mrb[12].mxu0 }
 0x122   : > { %v2213_v0 = vadd.f32 %v1656_v62, %v438_v27  ;;  %v753_v1 = vpop.f32.mrb[13].mxu0 }
 0x123   : > { %v2215_v2 = vadd.f32 %v753_v1, %v433_v28 }
 0x124   : > { %v861_v3 = vmin.f32 %v857_v53, %v2213_v0 }
 0x125   : > { %v860_v4 = vmin.f32 %v856_v54, %v2215_v2  ;;  %v1659_v5 = vpop.f32.mrb[14].mxu0  ;;  %v503_v54 = vpop.permute.xlu0 %502 }
 0x126   : > { %v2219_v6 = vadd.f32 %v1659_v5, %v448_v36  ;;  %v763_v7 = vpop.f32.mrb[15].mxu0 }
 0x127   : > { %v2221_v9 = vadd.f32 %v763_v7, %v443_v39 }
 0x128   : > { %v863_v11 = vmin.f32 %v859_v59, %v2219_v6 }
 0x129   : > { %v862_v13 = vmin.f32 %v858_v61, %v2221_v9  ;;  %v1662_v14 = vpop.f32.mrb[16].mxu0  ;;  %v513_v5 = vpop.permute.xlu0 %512 }
 0x12a   : > { %v2228_v15 = vadd.f32 %v1662_v14, %v458_v50  ;;  %v773_v16 = vpop.f32.mrb[17].mxu0  ;;  %v508_v50 = vpop.permute.xlu1 %507 }
 0x12b   : > { %v2230_v17 = vadd.f32 %v773_v16, %v453_v52 }
 0x12c   : > { %v865_v18 = vmin.f32 %v861_v3, %v2228_v15 }
 0x12d   : > { %v864_v20 = vmin.f32 %v860_v4, %v2230_v17  ;;  %v1665_v21 = vpop.f32.mrb[18].mxu0 }
 0x12e   : > { %v2234_v23 = vadd.f32 %v1665_v21, %v468_v60  ;;  %v783_v24 = vpop.f32.mrb[19].mxu0  ;;  %v518_v3 = vpop.permute.xlu1 %517 }
 0x12f   : > { %v2236_v25 = vadd.f32 %v783_v24, %v463_v63 }
 0x130   : > { %v867_v26 = vmin.f32 %v863_v11, %v2234_v23 }
 0x131   : > { %v866_v27 = vmin.f32 %v862_v13, %v2236_v25  ;;  %v1668_v28 = vpop.f32.mrb[20].mxu0 }
 0x132   : > { %v2240_v29 = vadd.f32 %v1668_v28, %v478_v8  ;;  %v793_v32 = vpop.f32.mrb[21].mxu0  ;;  %v528_v16 = vpop.permute.xlu1 %527 }
 0x133   : > { %v2242_v36 = vadd.f32 %v793_v32, %v473_v10  ;;  %v889_v32 = vlaneseq }
 0x134   : > { %v869_v38 = vmin.f32 %v865_v18, %v2240_v29 }
 0x135   : > { %v868_v39 = vmin.f32 %v864_v20, %v2242_v36  ;;  %v1671_v42 = vpop.f32.mrb[22].mxu0  ;;  %v523_v20 = vpop.permute.xlu0 %522 }
 0x136   : > { %v2246_v45 = vadd.f32 %v1671_v42, %v488_v19  ;;  %v803_v46 = vpop.f32.mrb[23].mxu0 }
 0x137   : > { %v2248_v47 = vadd.f32 %v803_v46, %v483_v22 }
 0x138   : > { %v871_v49 = vmin.f32 %v867_v26, %v2246_v45 }
 0x139   : > { %v870_v52 = vmin.f32 %v866_v27, %v2248_v47  ;;  %v1674_v53 = vpop.f32.mrb[24].mxu0 }
 0x13a   : > { %v2252_v55 = vadd.f32 %v1674_v53, %v498_v35  ;;  %v813_v57 = vpop.f32.mrb[25].mxu0 }
 0x13b   : > { %v2254_v59 = vadd.f32 %v813_v57, %v493_v37 }
 0x13c   : > { %v873_v60 = vmin.f32 %v869_v38, %v2252_v55  ;;  %v2276_v38 = vshrl.u32 %v889_v32, 7 }
 0x13d   : > { %v872_v61 = vmin.f32 %v868_v39, %v2254_v59  ;;  %v1677_v62 = vpop.f32.mrb[26].mxu0 }
 0x13e   : > { %v2258_v63 = vadd.f32 %v1677_v62, %v508_v50  ;;  %v823_v1 = vpop.f32.mrb[27].mxu0  ;;  %v2279_v46 = vadd.s32 8, %v2276_v38  ;;  %v2285_v50 = vadd.s32 16, %v2276_v38  ;;  %v2291_v53 = vadd.s32 32, %v2276_v38 }
 0x13f   : > { %v2260_v4 = vadd.f32 %v823_v1, %v503_v54  ;;  %v2294_v54 = vadd.s32 56, %v2276_v38  ;;  %v2303_v62 = vadd.s32 64, %v2276_v38  ;;  %v2306_v1 = vadd.s32 88, %v2276_v38 }
 0x140   : > { %v875_v7 = vmin.f32 %v871_v49, %v2258_v63  ;;  %v2282_v49 = vadd.s32 24, %v2276_v38  ;;  %v2348_v32 = vadd.s32 200, %v2276_v38 }
 0x141   : > { %v874_v8 = vmin.f32 %v870_v52, %v2260_v4  ;;  %v1680_v10 = vpop.f32.mrb[28].mxu0  ;;  %v2288_v52 = vadd.s32 40, %v2276_v38  ;;  %2726 = vst [vmem:[#allocation5_spill] sm:$0xff] %v2306_v1 }
 0x142   : > { %v2264_v11 = vadd.f32 %v1680_v10, %v518_v3  ;;  %v833_v12 = vpop.f32.mrb[29].mxu0  ;;  %v2309_v3 = vadd.s32 80, %v2276_v38  ;;  %v2318_v10 = vadd.s32 120, %v2276_v38  ;;  %2734 = vst [vmem:[#allocation13_spill] sm:$0xff] %v2348_v32  ;;  %v2371_v32 = vadd.s32 240, %v2276_v38 }
 0x143   : > { %v2266_v13 = vadd.f32 %v833_v12, %v513_v5  ;;  %v2312_v5 = vadd.s32 104, %v2276_v38  ;;  %v2321_v12 = vadd.s32 112, %v2276_v38 }
 0x144   : > { %v877_v14 = vmin.f32 %v873_v60, %v2264_v11  ;;  %v2297_v60 = vadd.s32 48, %v2276_v38  ;;  %2727 = vst [vmem:[#allocation6_spill] sm:$0xff] %v2309_v3  ;;  %2730 = vst [vmem:[#allocation9_spill] sm:$0xff] %v2318_v10 }
 0x145   : > { %v876_v18 = vmin.f32 %v872_v61, %v2266_v13  ;;  %v1683_v19 = vpop.f32.mrb[30].mxu0  ;;  %v2300_v61 = vadd.s32 72, %v2276_v38  ;;  %2728 = vst [vmem:[#allocation7_spill] sm:$0xff] %v2312_v5  ;;  %2731 = vst [vmem:[#allocation10_spill] sm:$0xff] %v2321_v12 }
 0x146   : > { %v2270_v21 = vadd.f32 %v1683_v19, %v528_v16  ;;  %v843_v22 = vpop.f32.mrb[31].mxu0  ;;  %v2327_v16 = vadd.s32 128, %v2276_v38  ;;  %v2333_v19 = vadd.s32 144, %v2276_v38  ;;  %2740 = vst [vmem:[#allocation19_spill] sm:$0xff] %v2371_v32 }
 0x147   : > { %v880_v24 = vmin.f32 %v876_v18, %v877_v14  ;;  %v2272_v26 = vadd.f32 %v843_v22, %v523_v20  ;;  %v2324_v14 = vadd.s32 136, %v2276_v38  ;;  %v2330_v18 = vadd.s32 152, %v2276_v38 }
 0x148   : > { %2725 = vst [vmem:[#allocation4_spill] sm:$0xff] %v2270_v21  ;;  %v879_v27 = vmin.f32 %v875_v7, %v2270_v21  ;;  %v2315_v7 = vadd.s32 96, %v2276_v38  ;;  %v2336_v20 = vadd.s32 168, %v2276_v38 }
 0x149   : > { %v878_v28 = vmin.f32 %v874_v8, %v2272_v26 }
 0x14a   : > { %2729 = vst [vmem:[#allocation8_spill] sm:$0xff] %v2315_v7 }
 0x14b   : > { %v881_v35 = vmin.f32 %v878_v28, %v879_v27  ;;  %v2342_v27 = vadd.s32 184, %v2276_v38  ;;  %v2345_v28 = vadd.s32 176, %v2276_v38 }
 0x14d   : > { %v882_v37 = vmin.f32 %v880_v24, %v881_v35  ;;  %v2339_v24 = vadd.s32 160, %v2276_v38  ;;  %2732 = vst [vmem:[#allocation11_spill] sm:$0xff] %v2342_v27  ;;  %2733 = vst [vmem:[#allocation12_spill] sm:$0xff] %v2345_v28  ;;  %v2351_v35 = vadd.s32 192, %v2276_v38  ;;  %v2365_v27 = vadd.s32 224, %v2276_v38 }
 0x14e   : > { %v2368_v28 = vadd.s32 248, %v2276_v38 }
 0x14f   : > { %v883_v39 = vrot.slane %v882_v37, 4  ;;  %2738 = vst [vmem:[#allocation17_spill] sm:$0xff] %v2365_v27 }
 0x150   : > { %2739 = vst [vmem:[#allocation18_spill] sm:$0xff] %v2368_v28 }
 0x151   : > { %v884_v42 = vmin.f32 %v882_v37, %v883_v39  ;;  %v2354_v37 = vadd.s32 216, %v2276_v38  ;;  %v2357_v39 = vadd.s32 208, %v2276_v38 }
 0x153   : > { %v885_v57 = vrot.slane %v884_v42, 2  ;;  %2735 = vst [vmem:[#allocation14_spill] sm:$0xff] %v2354_v37  ;;  %2736 = vst [vmem:[#allocation15_spill] sm:$0xff] %v2357_v39 }
 0x155   : > { %v886_v8 = vmin.f32 %v884_v42, %v885_v57  ;;  %v2362_v57 = vadd.s32 232, %v2276_v38 }
 0x157   : > { %v887_v22 = vrot.slane %v886_v8, 1  ;;  %2737 = vst [vmem:[#allocation16_spill] sm:$0xff] %v2362_v57 }
 0x159   : > { %v2359_v42 = vmin.f32 %v886_v8, %v887_v22 }
 0x15b   : > { %vm922_vm1 = vcmp.eq.f32.partialorder %v2181_v33, %v2359_v42  ;;  %vm923_vm2 = vcmp.eq.f32.partialorder %v2177_v30, %v2359_v42  ;;  %vm924_vm3 = vcmp.eq.f32.partialorder %v2193_v43, %v2359_v42  ;;  %vm925_vm4 = vcmp.eq.f32.partialorder %v2189_v40, %v2359_v42 }
 0x15c   : > { %vm926_vm5 = vcmp.eq.f32.partialorder %v2183_v34, %v2359_v42  ;;  %vm927_vm6 = vcmp.eq.f32.partialorder %v2179_v31, %v2359_v42  ;;  %vm928_vm7 = vcmp.eq.f32.partialorder %v2195_v44, %v2359_v42  ;;  %vm929_vm8 = vcmp.eq.f32.partialorder %v2191_v41, %v2359_v42 }
 0x15d   : > { %vm930_vm9 = vcmp.eq.f32.partialorder %v2203_v51, %v2359_v42  ;;  %vm947_vm12 = vcmp.eq.f32.partialorder %v2252_v55, %v2359_v42  ;;  %vm948_vm13 = vcmp.eq.f32.partialorder %v2260_v4, %v2359_v42  ;;  %vm949_vm14 = vcmp.eq.f32.partialorder %v2258_v63, %v2359_v42 }
 0x15e   : > { %vm950_vm15 = vcmp.eq.f32.partialorder %v2266_v13, %v2359_v42  ;;  %vm951_vm0 = vcmp.eq.f32.partialorder %v2264_v11, %v2359_v42  ;;  %vm952_vm10 = vcmp.eq.f32.partialorder %v2272_v26, %v2359_v42  ;;  %vm953_vm11 = vcmp.eq.f32.partialorder %v2270_v21, %v2359_v42 }
 0x15f   : > { %v954_v8 = vsel %vm922_vm1, %v2276_v38, 256  ;;  %v955_v22 = vsel %vm923_vm2, %v2279_v46, 256  ;;  %v956_v28 = vsel %vm924_vm3, %v2285_v50, 256  ;;  %v957_v21 = vsel %vm925_vm4, %v2282_v49, 256 }
 0x160   : > { %v958_v33 = vsel %vm926_vm5, %v2291_v53, 256  ;;  %v959_v30 = vsel %vm927_vm6, %v2288_v52, 256  ;;  %v960_v43 = vsel %vm928_vm7, %v2297_v60, 256  ;;  %v961_v40 = vsel %vm929_vm8, %v2294_v54, 256 }
 0x161   : > { %v962_v34 = vsel %vm930_vm9, %v2303_v62, 256  ;;  %vm2741_vm1 = vcmp.eq.f32.partialorder %v2201_v48, %v2359_v42  ;;  %vm2742_vm2 = vcmp.eq.f32.partialorder %v2209_v58, %v2359_v42  ;;  %vm2743_vm3 = vcmp.eq.f32.partialorder %v2207_v56, %v2359_v42 }
 0x162   : > { %v963_v31 = vsel %vm2741_vm1, %v2300_v61, 256  ;;  %v964_v44 = vsel %vm2742_vm2, %v2309_v3, 256  ;;  %v965_v41 = vsel %vm2743_vm3, %v2306_v1, 256  ;;  %vm2744_vm4 = vcmp.eq.f32.partialorder %v2215_v2, %v2359_v42 }
 0x163   : > { %v966_v51 = vsel %vm2744_vm4, %v2315_v7, 256  ;;  %vm2745_vm5 = vcmp.eq.f32.partialorder %v2213_v0, %v2359_v42  ;;  %vm2746_vm6 = vcmp.eq.f32.partialorder %v2221_v9, %v2359_v42  ;;  %vm2747_vm7 = vcmp.eq.f32.partialorder %v2219_v6, %v2359_v42  ;;  %v2760_v7 = vld [vmem:[#allocation18_spill] sm:$0xff] }
 0x164   : > { %v967_v48 = vsel %vm2745_vm5, %v2312_v5, 256  ;;  %v968_v58 = vsel %vm2746_vm6, %v2321_v12, 256  ;;  %v969_v56 = vsel %vm2747_vm7, %v2318_v10, 256  ;;  %vm2748_vm8 = vcmp.eq.f32.partialorder %v2230_v17, %v2359_v42  ;;  %v2754_v10 = vld [vmem:[#allocation12_spill] sm:$0xff]  ;;  %v2756_v12 = vld [vmem:[#allocation11_spill] sm:$0xff]  ;;  %v2759_v5 = vld [vmem:[#allocation13_spill] sm:$0xff] }
 0x165   : > { %v970_v2 = vsel %vm2748_vm8, %v2327_v16, 256  ;;  %vm2749_vm9 = vcmp.eq.f32.partialorder %v2228_v15, %v2359_v42  ;;  %vm2750_vm1 = vcmp.eq.f32.partialorder %v2236_v25, %v2359_v42  ;;  %vm2751_vm2 = vcmp.eq.f32.partialorder %v2234_v23, %v2359_v42 }
 0x166   : > { %v971_v0 = vsel %vm2749_vm9, %v2324_v14, 256  ;;  %v972_v9 = vsel %vm2750_vm1, %v2333_v19, 256  ;;  %v973_v6 = vsel %vm2751_vm2, %v2330_v18, 256  ;;  %vm2752_vm3 = vcmp.eq.f32.partialorder %v2242_v36, %v2359_v42 }
 0x167   : > { %v974_v17 = vsel %vm2752_vm3, %v2339_v24, 256  ;;  %vm2753_vm4 = vcmp.eq.f32.partialorder %v2240_v29, %v2359_v42  ;;  %vm2755_vm5 = vcmp.eq.f32.partialorder %v2248_v47, %v2359_v42  ;;  %vm2757_vm6 = vcmp.eq.f32.partialorder %v2246_v45, %v2359_v42 }
 0x168   : > { %v975_v15 = vsel %vm2753_vm4, %v2336_v20, 256  ;;  %v976_v25 = vsel %vm2755_vm5, %v2754_v10, 256  ;;  %v977_v23 = vsel %vm2757_vm6, %v2756_v12, 256  ;;  %vm2758_vm7 = vcmp.eq.f32.partialorder %v2254_v59, %v2359_v42 }
 0x169   : > { %v978_v36 = vsel %vm2758_vm7, %v2351_v35, 256  ;;  %v979_v29 = vsel %vm947_vm12, %v2759_v5, 256  ;;  %v980_v47 = vsel %vm948_vm13, %v2357_v39, 256  ;;  %v981_v45 = vsel %vm949_vm14, %v2354_v37, 256 }
 0x16a   : > { %v982_v59 = vsel %vm950_vm15, %v2365_v27, 256  ;;  %v983_v55 = vsel %vm951_vm0, %v2362_v57, 256  ;;  %v984_v4 = vsel %vm952_vm10, %v2371_v32, 256  ;;  %v985_v63 = vsel %vm953_vm11, %v2760_v7, 256 }
 0x16b   : > { %vm986_vm12 = vcmp.lt.s32.totalorder %v954_v8, %v958_v33  ;;  %vm988_vm13 = vcmp.lt.s32.totalorder %v955_v22, %v959_v30  ;;  %vm990_vm14 = vcmp.lt.s32.totalorder %v956_v28, %v960_v43  ;;  %vm992_vm8 = vcmp.lt.s32.totalorder %v957_v21, %v961_v40 }
 0x16c   : > { %v987_v13 = vsel %vm986_vm12, %v954_v8, %v958_v33  ;;  %v989_v27 = vsel %vm988_vm13, %v955_v22, %v959_v30  ;;  %v991_v3 = vsel %vm990_vm14, %v956_v28, %v960_v43  ;;  %v993_v37 = vsel %vm992_vm8, %v957_v21, %v961_v40 }
 0x16d   : > { %vm994_vm15 = vcmp.lt.s32.totalorder %v987_v13, %v962_v34  ;;  %vm996_vm0 = vcmp.lt.s32.totalorder %v989_v27, %v963_v31  ;;  %vm998_vm9 = vcmp.lt.s32.totalorder %v991_v3, %v964_v44  ;;  %vm1000_vm1 = vcmp.lt.s32.totalorder %v993_v37, %v965_v41 }
 0x16e   : > { %v995_v11 = vsel %vm994_vm15, %v987_v13, %v962_v34  ;;  %v997_v26 = vsel %vm996_vm0, %v989_v27, %v963_v31  ;;  %v999_v32 = vsel %vm998_vm9, %v991_v3, %v964_v44  ;;  %v1001_v57 = vsel %vm1000_vm1, %v993_v37, %v965_v41 }
 0x16f   : > { %vm1002_vm10 = vcmp.lt.s32.totalorder %v995_v11, %v966_v51  ;;  %vm1004_vm2 = vcmp.lt.s32.totalorder %v997_v26, %v967_v48  ;;  %vm1006_vm3 = vcmp.lt.s32.totalorder %v999_v32, %v968_v58  ;;  %vm1008_vm11 = vcmp.lt.s32.totalorder %v1001_v57, %v969_v56 }
 0x170   : > { %v1003_v1 = vsel %vm1002_vm10, %v995_v11, %v966_v51  ;;  %v1005_v42 = vsel %vm1004_vm2, %v997_v26, %v967_v48  ;;  %v1007_v7 = vsel %vm1006_vm3, %v999_v32, %v968_v58  ;;  %v1009_v39 = vsel %vm1008_vm11, %v1001_v57, %v969_v56  ;;  %v1786_v26 = vld [vmem:[%s1951_s7 + $0x10] sm:$0xff] }
 0x171   : > { %vm1010_vm4 = vcmp.lt.s32.totalorder %v1003_v1, %v970_v2  ;;  %vm1012_vm5 = vcmp.lt.s32.totalorder %v1005_v42, %v971_v0  ;;  %vm1014_vm6 = vcmp.lt.s32.totalorder %v1007_v7, %v972_v9  ;;  %vm1016_vm7 = vcmp.lt.s32.totalorder %v1009_v39, %v973_v6 }
 0x172   : > { %v1011_v21 = vsel %vm1010_vm4, %v1003_v1, %v970_v2  ;;  %v1013_v28 = vsel %vm1012_vm5, %v1005_v42, %v971_v0  ;;  %v1015_v8 = vsel %vm1014_vm6, %v1007_v7, %v972_v9  ;;  %v1017_v22 = vsel %vm1016_vm7, %v1009_v39, %v973_v6 }
 0x173   : > { %vm1018_vm12 = vcmp.lt.s32.totalorder %v1011_v21, %v974_v17  ;;  %vm1020_vm13 = vcmp.lt.s32.totalorder %v1013_v28, %v975_v15  ;;  %vm1022_vm14 = vcmp.lt.s32.totalorder %v1015_v8, %v976_v25  ;;  %vm1024_vm8 = vcmp.lt.s32.totalorder %v1017_v22, %v977_v23 }
 0x174   : > { %v1019_v3 = vsel %vm1018_vm12, %v1011_v21, %v974_v17  ;;  %v1021_v27 = vsel %vm1020_vm13, %v1013_v28, %v975_v15  ;;  %v1023_v37 = vsel %vm1022_vm14, %v1015_v8, %v976_v25  ;;  %v1025_v33 = vsel %vm1024_vm8, %v1017_v22, %v977_v23  ;;  %v1784_v23 = vld [vmem:[%s1951_s7] sm:$0xff] }
 0x175   : > { %vm1026_vm15 = vcmp.lt.s32.totalorder %v1019_v3, %v978_v36  ;;  %vm1028_vm0 = vcmp.lt.s32.totalorder %v1021_v27, %v979_v29  ;;  %vm1030_vm9 = vcmp.lt.s32.totalorder %v1023_v37, %v980_v47  ;;  %vm1032_vm1 = vcmp.lt.s32.totalorder %v1025_v33, %v981_v45 }
 0x176   : > { %v1027_v32 = vsel %vm1026_vm15, %v1019_v3, %v978_v36  ;;  %v1029_v57 = vsel %vm1028_vm0, %v1021_v27, %v979_v29  ;;  %v1031_v30 = vsel %vm1030_vm9, %v1023_v37, %v980_v47  ;;  %v1033_v43 = vsel %vm1032_vm1, %v1025_v33, %v981_v45  ;;  %v1785_v47 = vld [vmem:[%s1951_s7 + $0x8] sm:$0xff]  ;;  %v1787_v3 = vld [vmem:[%s1951_s7 + $0x18] sm:$0xff]  ;;  %s1544_s7 = sshll.u32 (%p1924_p6), %s1830_s21, 3 }
 0x177   : > { %vm1034_vm10 = vcmp.lt.s32.totalorder %v1027_v32, %v982_v59  ;;  %vm1036_vm2 = vcmp.lt.s32.totalorder %v1029_v57, %v983_v55  ;;  %vm1038_vm3 = vcmp.lt.s32.totalorder %v1031_v30, %v984_v4  ;;  %vm1040_vm11 = vcmp.lt.s32.totalorder %v1033_v43, %v985_v63  ;;  %s1283_s14 = sadd.s32 (%p1924_p6), %s1826_s20, %s1544_s7 }
 0x178   : > { %v1035_v7 = vsel %vm1034_vm10, %v1027_v32, %v982_v59  ;;  %v1037_v39 = vsel %vm1036_vm2, %v1029_v57, %v983_v55  ;;  %v1039_v40 = vsel %vm1038_vm3, %v1031_v30, %v984_v4  ;;  %v1041_v34 = vsel %vm1040_vm11, %v1033_v43, %v985_v63  ;;  %s1545_s15 = sshll.u32 (%p1924_p6), %s1283_s14, 3 }
 0x179   : > { %vm1042_vm4 = vcmp.lt.s32.totalorder %v1035_v7, %v1037_v39  ;;  %vm1044_vm5 = vcmp.lt.s32.totalorder %v1039_v40, %v1041_v34  ;;  %v1845_v9 = vmov 1.0|1.0   ;;  %s1285_s27 = scalar_lea.vmem (%p1924_p6), %s2706_s4, %s1545_s15 }
 0x17a   : > { %v1043_v31 = vsel %vm1042_vm4, %v1035_v7, %v1037_v39  ;;  %v1045_v44 = vsel %vm1044_vm5, %v1039_v40, %v1041_v34 }
 0x17b   : > { %vm1046_vm6 = vcmp.lt.s32.totalorder %v1043_v31, %v1045_v44 }
 0x17c   : > { %v1047_v41 = vsel %vm1046_vm6, %v1043_v31, %v1045_v44 }
 0x17d   : > { %v1048_v51 = vrot.slane %v1047_v41, 4 }
 0x17f   : > { %vm1049_vm7 = vcmp.lt.s32.totalorder %v1047_v41, %v1048_v51 }
 0x180   : > { %v1050_v48 = vsel %vm1049_vm7, %v1047_v41, %v1048_v51 }
 0x181   : > { %v1051_v58 = vrot.slane %v1050_v48, 2 }
 0x183   : > { %vm1052_vm12 = vcmp.lt.s32.totalorder %v1050_v48, %v1051_v58 }
 0x184   : > { %v1053_v56 = vsel %vm1052_vm12, %v1050_v48, %v1051_v58 }
 0x185   : > { %v1054_v2 = vrot.slane %v1053_v56, 1 }
 0x187   : > { %vm1055_vm13 = vcmp.lt.s32.totalorder %v1053_v56, %v1054_v2 }
 0x188   : > { %v2565_v0 = vsel %vm1055_vm13, %v1053_v56, %v1054_v2 }
 0x189   : > { %vm1073_vm14 = vcmp.eq.s32.totalorder %v2327_v16, %v2565_v0  ;;  %vm1074_vm8 = vcmp.eq.s32.totalorder %v2324_v14, %v2565_v0  ;;  %vm1057_vm15 = vcmp.eq.s32.totalorder %v2276_v38, %v2565_v0  ;;  %vm1058_vm0 = vcmp.eq.s32.totalorder %v2279_v46, %v2565_v0  ;;  %v2762_v38 = vld [vmem:[#allocation15_spill] sm:$0xff]  ;;  %v2763_v46 = vld [vmem:[#allocation14_spill] sm:$0xff] }
 0x18a   : > { %vm1692_vm9 = vmpackc.low %vm1074_vm8, %vm1073_vm14  ;;  %vm1075_vm1 = vcmp.eq.s32.totalorder %v2333_v19, %v2565_v0  ;;  %vm1076_vm10 = vcmp.eq.s32.totalorder %v2330_v18, %v2565_v0  ;;  %vm1059_vm11 = vcmp.eq.s32.totalorder %v2285_v50, %v2565_v0  ;;  %vm1060_vm4 = vcmp.eq.s32.totalorder %v2282_v49, %v2565_v0  ;;  %v2764_v49 = vld [vmem:[#allocation6_spill] sm:$0xff]  ;;  %v2765_v50 = vld [vmem:[#allocation5_spill] sm:$0xff] }
 0x18b   : > { %1693 = vmatprep.subr.msk.bf16.mxu1 %vm1692_vm9, %v1845_v9  ;;  %vm1694_vm2 = vmpackc.low %vm1058_vm0, %vm1057_vm15  ;;  %vm1077_vm5 = vcmp.eq.s32.totalorder %v2339_v24, %v2565_v0  ;;  %vm1078_vm6 = vcmp.eq.s32.totalorder %v2336_v20, %v2565_v0  ;;  %vm1061_vm13 = vcmp.eq.s32.totalorder %v2291_v53, %v2565_v0  ;;  %vm1062_vm14 = vcmp.eq.s32.totalorder %v2288_v52, %v2565_v0  ;;  %v2766_v52 = vld [vmem:[#allocation17_spill] sm:$0xff]  ;;  %v2767_v53 = vld [vmem:[#allocation16_spill] sm:$0xff] }
 0x18c   : > { %1695 = vmatpush3.bf16.msk.msra.mxu1 %vm1694_vm2, %v1845_v9  ;;  %vm1696_vm3 = vmpackc.low %vm1076_vm10, %vm1075_vm1  ;;  %vm1079_vm8 = vcmp.eq.s32.totalorder %v2754_v10, %v2565_v0  ;;  %vm1080_vm15 = vcmp.eq.s32.totalorder %v2756_v12, %v2565_v0  ;;  %vm1063_vm1 = vcmp.eq.s32.totalorder %v2297_v60, %v2565_v0  ;;  %vm1064_vm10 = vcmp.eq.s32.totalorder %v2294_v54, %v2565_v0  ;;  %v2768_v54 = vld [vmem:[#allocation8_spill] sm:$0xff]  ;;  %v2769_v60 = vld [vmem:[#allocation7_spill] sm:$0xff] }
 0x18d   : > { %1697 = vmatprep.subr.msk.bf16.mxu1 %vm1696_vm3, %v1845_v9  ;;  %vm1698_vm7 = vmpackc.low %vm1060_vm4, %vm1059_vm11  ;;  %vm1081_vm2 = vcmp.eq.s32.totalorder %v2351_v35, %v2565_v0  ;;  %vm1082_vm3 = vcmp.eq.s32.totalorder %v2759_v5, %v2565_v0  ;;  %v2772_v5 = vld [vmem:[#allocation10_spill] sm:$0xff]  ;;  %v2773_v10 = vld [vmem:[#allocation9_spill] sm:$0xff] }
 0x18e   : > { %vm1700_vm12 = vmpackc.low %vm1078_vm6, %vm1077_vm5  ;;  %vm1065_vm5 = vcmp.eq.s32.totalorder %v2303_v62, %v2565_v0  ;;  %vm1066_vm6 = vcmp.eq.s32.totalorder %v2300_v61, %v2565_v0  ;;  %v2770_v61 = vld [vmem:[#allocation19_spill] sm:$0xff]  ;;  %v2771_v62 = vld [vmem:[#allocation18_spill] sm:$0xff] }
 0x18f   : > { %vm1702_vm0 = vmpackc.low %vm1062_vm14, %vm1061_vm13  ;;  %v1153_v12 = vld [vmem:[%s2704_s2] sm:$0xff]  ;;  %v1156_v14 = vld [vmem:[%s2704_s2 + $0x18] sm:$0xff] }
 0x190   : > { %1699 = vmatpush3.bf16.msk.msra.mxu1 %vm1698_vm7, %v1845_v9  ;;  %vm1704_vm9 = vmpackc.low %vm1080_vm15, %vm1079_vm8  ;;  %vm1083_vm7 = vcmp.eq.s32.totalorder %v2762_v38, %v2565_v0  ;;  %vm1067_vm8 = vcmp.eq.s32.totalorder %v2764_v49, %v2565_v0  ;;  %vm1068_vm15 = vcmp.eq.s32.totalorder %v2765_v50, %v2565_v0  ;;  %v1155_v16 = vld [vmem:[%s2704_s2 + $0x10] sm:$0xff]  ;;  %v1158_v18 = vld [vmem:[%s2704_s2 + $0x28] sm:$0xff] }
 0x191   : > { %1701 = vmatprep.subr.msk.bf16.mxu1 %vm1700_vm12, %v1845_v9  ;;  %vm1706_vm11 = vmpackc.low %vm1064_vm10, %vm1063_vm1  ;;  %vm1084_vm12 = vcmp.eq.s32.totalorder %v2763_v46, %v2565_v0  ;;  %v1157_v19 = vld [vmem:[%s2704_s2 + $0x20] sm:$0xff]  ;;  %v1160_v20 = vld [vmem:[%s2704_s2 + $0x38] sm:$0xff] }
 0x192   : > { %vm1708_vm4 = vmpackc.low %vm1082_vm3, %vm1081_vm2  ;;  %vm1069_vm2 = vcmp.eq.s32.totalorder %v2768_v54, %v2565_v0  ;;  %vm1070_vm3 = vcmp.eq.s32.totalorder %v2769_v60, %v2565_v0  ;;  %v1159_v24 = vld [vmem:[%s2704_s2 + $0x30] sm:$0xff] }
 0x193   : > { %vm1710_vm13 = vmpackc.low %vm1066_vm6, %vm1065_vm5 }
 0x194   : > { %1703 = vmatpush3.bf16.msk.msra.mxu1 %vm1702_vm0, %v1845_v9  ;;  %vm1712_vm14 = vmpackc.low %vm1084_vm12, %vm1083_vm7  ;;  %vm1085_vm0 = vcmp.eq.s32.totalorder %v2766_v52, %v2565_v0  ;;  %vm1071_vm7 = vcmp.eq.s32.totalorder %v2772_v5, %v2565_v0  ;;  %vm1072_vm12 = vcmp.eq.s32.totalorder %v2773_v10, %v2565_v0 }
 0x195   : > { %1705 = vmatprep.subr.msk.bf16.mxu1 %vm1704_vm9, %v1845_v9  ;;  %vm1086_vm9 = vcmp.eq.s32.totalorder %v2767_v53, %v2565_v0  ;;  %vm1714_vm1 = vmpackc.low %vm1068_vm15, %vm1067_vm8 }
 0x196   : > { %vm1716_vm10 = vmpackc.low %vm1086_vm9, %vm1085_vm0 }
 0x197   : > { %vm1718_vm5 = vmpackc.low %vm1070_vm3, %vm1069_vm2 }
 0x198   : > { %1707 = vmatpush3.bf16.msk.msra.mxu1 %vm1706_vm11, %v1845_v9  ;;  %vm1087_vm11 = vcmp.eq.s32.totalorder %v2770_v61, %v2565_v0 }
 0x199   : > { %1709 = vmatprep.subr.msk.bf16.mxu1 %vm1708_vm4, %v1845_v9  ;;  %vm1088_vm4 = vcmp.eq.s32.totalorder %v2771_v62, %v2565_v0 }
 0x19a   : > { %vm1720_vm6 = vmpackc.low %vm1088_vm4, %vm1087_vm11 }
 0x19c   : > { %1711 = vmatpush3.bf16.msk.msra.mxu1 %vm1710_vm13, %v1845_v9  ;;  %vm1722_vm13 = vmpackc.low %vm1072_vm12, %vm1071_vm7 }
 0x19d   : > { %1713 = vmatprep.subr.msk.bf16.mxu1 %vm1712_vm14, %v1845_v9 }
 0x1a0   : > { %1715 = vmatpush3.bf16.msk.msra.mxu1 %vm1714_vm1, %v1845_v9 }
 0x1a1   : > { %1717 = vmatprep.subr.msk.bf16.mxu1 %vm1716_vm10, %v1845_v9 }
 0x1a4   : > { %1719 = vmatpush3.bf16.msk.msra.mxu1 %vm1718_vm5, %v1845_v9 }
 0x1a5   : > { %1721 = vmatprep.subr.msk.bf16.mxu1 %vm1720_vm6, %v1845_v9 }
 0x1a8   : > { %1723 = vmatpush3.bf16.msk.msra.mxu1 %vm1722_vm13, %v1845_v9 }
 0x1ab   : > { %1226 = vmatmul.mubr.f32.vlgmr.msra.gmra.mrb[0].mxu1 %v1153_v12 }
 0x1ac   : > { %1230 = vmatprep.mubr.f32.mxu1 %v1156_v14 }
 0x1af   : > { %1231 = vmatmul.mubr.f32.gmra.mrb[2].mxu1 %v1155_v16 }
 0x1b0   : > { %1235 = vmatprep.mubr.f32.mxu1 %v1158_v18 }
 0x1b3   : > { %1236 = vmatmul.mubr.f32.gmra.mrb[4].mxu1 %v1157_v19 }
 0x1b4   : > { %1240 = vmatprep.mubr.f32.mxu1 %v1160_v20 }
 0x1b7   : > { %1241 = vmatmul.mubr.f32.gmra.mrb[6].mxu1 %v1159_v24 }
 0x27e   : > { %v1616_v35 = vpop.f32.mrb[0].mxu1 }
 0x27f   : > { %v1617_v6 = vpop.f32.mrb[1].mxu1 }
 0x280   : > { %v1618_v17 = vadd.f32 %v1617_v6, %v1616_v35 }
 0x282   : > { %1246 = vst [vmem:[%s2653_s30] sm:$0xff] %v1618_v17  ;;  %v1619_v15 = vpop.f32.mrb[2].mxu1  ;;  %v1250_v36 = vsub.f32 %v1618_v17, %v1784_v23 }
 0x283   : > { %v1620_v25 = vpop.f32.mrb[3].mxu1 }
 0x284   : > { %v1621_v29 = vadd.f32 %v1620_v25, %v1619_v15  ;;  %v1254_v4 = vmul.f32 %v1250_v36, %v1250_v36 }
 0x286   : > { %1247 = vst [vmem:[%s2653_s30 + $0x8] sm:$0xff] %v1621_v29  ;;  %v1251_v45 = vsub.f32 %v1621_v29, %v1785_v47  ;;  %v1622_v59 = vpop.f32.mrb[4].mxu1 }
 0x287   : > { %v1623_v55 = vpop.f32.mrb[5].mxu1 }
 0x288   : > { %v1255_v63 = vmul.f32 %v1251_v45, %v1251_v45  ;;  %v1624_v13 = vadd.f32 %v1623_v55, %v1622_v59 }
 0x289   : > { %v1319_v40 = vld [vmem:[%s2653_s30] sm:$0xff] (%p1924_p6) }
 0x28a   : > { %v1258_v11 = vadd.f32 %v1255_v63, %v1254_v4  ;;  %1248 = vst [vmem:[%s2653_s30 + $0x10] sm:$0xff] %v1624_v13  ;;  %v1252_v1 = vsub.f32 %v1624_v13, %v1786_v26  ;;  %v1625_v42 = vpop.f32.mrb[6].mxu1  ;;  %1320 = vst [vmem:[%s1285_s27] sm:$0xff] (%p1924_p6), %v1319_v40 }
 0x28b   : > { %v1626_v21 = vpop.f32.mrb[7].mxu1 }
 0x28c   : > { %v1256_v28 = vmul.f32 %v1252_v1, %v1252_v1  ;;  %v1627_v8 = vadd.f32 %v1626_v21, %v1625_v42 }
 0x28d   : > { %v1321_v34 = vld [vmem:[%s2653_s30 + $0x8] sm:$0xff] (%p1924_p6) }
 0x28e   : > { %v1259_v22 = vadd.f32 %v1258_v11, %v1256_v28  ;;  %1249 = vst [vmem:[%s2653_s30 + $0x18] sm:$0xff] %v1627_v8  ;;  %v1253_v27 = vsub.f32 %v1627_v8, %v1787_v3  ;;  %1322 = vst [vmem:[%s1285_s27 + $0x10] sm:$0xff] (%p1924_p6), %v1321_v34 }
 0x290   : > { %v1257_v37 = vmul.f32 %v1253_v27, %v1253_v27 }
 0x291   : > { %v1323_v31 = vld [vmem:[%s2653_s30 + $0x10] sm:$0xff] (%p1924_p6) }
 0x292   : > { %v1260_v33 = vadd.f32 %v1259_v22, %v1257_v37  ;;  %1324 = vst [vmem:[%s1285_s27 + $0x20] sm:$0xff] (%p1924_p6), %v1323_v31 }
 0x294   : > { %v1261_v32 = vrot.slane %v1260_v33, 4 }
 0x295   : > { %v1325_v44 = vld [vmem:[%s2653_s30 + $0x18] sm:$0xff] (%p1924_p6) }
 0x296   : > { %v1262_v57 = vadd.f32 %v1261_v32, %v1260_v33  ;;  %1326 = vst [vmem:[%s1285_s27 + $0x30] sm:$0xff] (%p1924_p6), %v1325_v44 }
 0x298   : > { %v1263_v30 = vrot.slane %v1262_v57, 2 }
 0x29a   : > { %v1264_v43 = vadd.f32 %v1263_v30, %v1262_v57  ;;  %1281 = sbr.rel (!%p1924_p6) target bundleno = 673 (0x2a1), region = 78 }
 0x29c   : > { %v1265_v7 = vrot.slane %v1264_v43, 1 }
 0x29e   : > { %v1266_v39 = vadd.f32 %v1265_v7, %v1264_v43 }
 0x2a0   : > { %1267 = vst [vmem:[%s301_s13] sm:$0x1] %v1266_v39 }
 0x2a1 PF: > { %s16_s24 = sadd.s32 1, %s1842_s24   ;;  %s2774_s18 = smov %s1822_s19 }
 0x2a2   : > { %p13_p0 = scmp.ge.s32.totalorder %s16_s24, 6   ;;  %s2775_s19 = smov %s1932_s8 }
 0x2a3   : > { %s2776_s20 = smov %s1834_s22  ;;  %s2777_s21 = smov %s1838_s23 }
 0x2a4   : > { %s2778_s22 = smov %s2781_s25  ;;  %s2779_s23 = smov %s2785_s26 }
 0x2a5   :  { %15 = sbr.rel (!%p13_p0) target bundleno = 4 (0x4), region = 159 }

</bundles_post_ra>
